<compile_context>
chip_gen: v7x
topology: tpu7x:2x2x1
jax: 0.10.0
libtpu: 0.0.40
codegen_flags: <defaults>
</compile_context>

<pallas_src>
import numpy as np

import jax
import jax.numpy as jnp
from jax.experimental import pallas as pl
from jax.experimental.pallas import tpu as pltpu

E = 7            # number of device electrodes
E_PAD = 8        # padded electrode dim (sublane-friendly; row 7 carries the bias 1.0)
HID = 32         # surrogate MLP hidden width
WINDOW = 2       # patch size (2x2 -> 4 data inputs per node)


# ----------------------------- Pallas kernel -------------------------------
def make_dnpu_kernel(tanh_dtype):
    """Surrogate DNPU model (3-layer tanh MLP) with the batch on the lane axis.

    x_ref : (E_PAD, TILE_B) bf16 electrode values; row E_PAD-1 == 1.0 (bias)
    w1_ref: (HID, E_PAD) bf16, column E_PAD-1 == b1 (layer-1 bias folded in)
    w2_ref: (HID, HID)   bf16      b2_ref: (HID, 1) f32
    w3_ref: (1, HID)     bf16      b3_ref: (1, 1)   f32 scalar in SMEM
    o_ref : (1, TILE_B)  f32 lane-dense output slab
    """
    def kernel(x_ref, w1_ref, w2_ref, b2_ref, w3_ref, b3_ref, o_ref):
        x = x_ref[...]
        # Layer 1 (bias folded into the MXU via the 1.0 electrode row).
        z1 = jnp.dot(w1_ref[...], x, preferred_element_type=jnp.float32)
        h1 = jnp.tanh(z1.astype(tanh_dtype))
        # Layer 2.
        z2 = jnp.dot(w2_ref[...], h1.astype(w2_ref.dtype),
                     preferred_element_type=jnp.float32) + b2_ref[...]
        h2 = jnp.tanh(z2.astype(tanh_dtype))
        # Output layer.
        o_ref[...] = (jnp.dot(w3_ref[...], h2.astype(w3_ref.dtype),
                              preferred_element_type=jnp.float32)
                      + b3_ref[0, 0])
    return kernel


def _choose_tile(b):
    """Largest lane-aligned tile (<= 8192 cols, safe under v5e's 16 MiB scoped
    VMEM default) such that, when b is large, the grid has >= 6 steps
    (>= 3 per TensorCore on v7x so input DMA overlaps compute)."""
    for cand in (8192, 4096, 2048, 1024, 512, 256):
        if pl.cdiv(b, cand) >= 6:
            return cand
    return 128


def _pick_tanh_dtype():
    """bf16 tanh on chips with native bf16 EUP/VPU (v6e / v7x); f32 otherwise."""
    try:
        kind = jax.devices()[0].device_kind.lower()
    except Exception:
        return jnp.float32
    if any(tag in kind for tag in ("v6", "v7", "7x")):
        return jnp.bfloat16
    return jnp.float32


def dnpu_surrogate_pallas(elec_t, params, tanh_dtype):
    """elec_t: (E_PAD, B) bf16 -> (1, B) f32 via the surrogate MLP."""
    e_pad, b = elec_t.shape
    assert e_pad == E_PAD
    tile_b = _choose_tile(b)
    grid = pl.cdiv(b, tile_b)
    w1t, w2t, b2t, w3t, b3 = params

    flops_per_col = 2 * (HID * E_PAD + HID * HID + HID)
    weight_bytes = sum(int(p.size) * p.dtype.itemsize for p in params)
    cost = pl.CostEstimate(
        flops=flops_per_col * int(b),
        transcendentals=2 * HID * int(b),
        bytes_accessed=int(elec_t.size) * elec_t.dtype.itemsize
                       + int(b) * 4 + weight_bytes)

    return pl.pallas_call(
        make_dnpu_kernel(tanh_dtype),
        out_shape=jax.ShapeDtypeStruct((1, b), jnp.float32),
        grid_spec=pltpu.PrefetchScalarGridSpec(
            num_scalar_prefetch=0,
            grid=(grid,),
            in_specs=[
                pl.BlockSpec((E_PAD, tile_b), lambda i: (0, i)),   # electrode cols (streamed)
                pl.BlockSpec((HID, E_PAD),    lambda i: (0, 0)),   # W1t (resident, bias folded)
                pl.BlockSpec((HID, HID),      lambda i: (0, 0)),   # W2t
                pl.BlockSpec((HID, 1),        lambda i: (0, 0)),   # b2
                pl.BlockSpec((1, HID),        lambda i: (0, 0)),   # W3t
                pl.BlockSpec(memory_space=pltpu.MemorySpace.SMEM), # b3 scalar
            ],
            out_specs=pl.BlockSpec((1, tile_b), lambda i: (0, i)),
        ),
        compiler_params=pltpu.CompilerParams(
            dimension_semantics=("parallel",)),
        cost_estimate=cost,
    )(elec_t, w1t, w2t, b2t, w3t, b3)


# ------------------------------- JAX glue ----------------------------------
def unfold_2x2(x):
    """torch.nn.functional.unfold(x, kernel_size=2, stride=2), as (N, L, C*k*k)."""
    N, C, H, W = x.shape
    ws = WINDOW
    x = x.reshape(N, C, H // ws, ws, W // ws, ws)
    x = jnp.transpose(x, (0, 2, 4, 1, 3, 5))           # (N, H', W', C, kh, kw)
    L = (H // ws) * (W // ws)
    return x.reshape(N, L, C * ws * ws)                # patch channel order = (C, kh, kw)


def assemble_electrodes_t(patches, inputs_list, control_list, controls, dtype):
    """Scatter per-node data inputs + control voltages into the 7-electrode
    layout via a per-node gather, emitted directly in transposed, lane-dense
    (E_PAD, N*L) form.  The extra E_PAD row is 1.0 (layer-1 bias carrier)."""
    N, L, K = patches.shape                                   # K = 4 data inputs
    n_ctrl = control_list.shape[1]                            # 3 control electrodes
    # Source stack: rows 0..3 = patch values, 4..6 = control voltages, 7 = 1.0
    patches_t = jnp.transpose(patches, (2, 0, 1)).astype(dtype)             # (4, N, L)
    ctrl_t = jnp.broadcast_to(controls.T[:, None, :].astype(dtype),
                              (n_ctrl, N, L))                               # (3, N, L)
    ones_t = jnp.ones((1, N, L), dtype)
    src_t = jnp.concatenate([patches_t, ctrl_t, ones_t], axis=0)            # (8, N, L)
    # Per-node electrode -> source-row mapping (a permutation of 0..7).
    l_idx = jnp.arange(L)[:, None]
    src_row = jnp.zeros((L, E_PAD), jnp.int32)
    src_row = src_row.at[l_idx, inputs_list].set(
        jnp.arange(K, dtype=jnp.int32)[None, :])
    src_row = src_row.at[l_idx, control_list].set(
        K + jnp.arange(n_ctrl, dtype=jnp.int32)[None, :])
    src_row = src_row.at[:, E:].set(K + n_ctrl)                             # bias row
    idx = jnp.broadcast_to(src_row.T[:, None, :], (E_PAD, N, L))            # (8, N, L)
    elec_t = jnp.take_along_axis(src_t, idx, axis=0)                        # (8, N, L)
    return elec_t.reshape(E_PAD, N * L)                                     # col = n*L + l


def _check_electrode_partition(inputs_list, control_list):
    """Data/control electrodes must be disjoint and cover 0..E-1 per node
    (overlaps would silently alias; gaps would silently default to source 0)."""
    il = np.asarray(inputs_list)
    cl = np.asarray(control_list)
    assert not np.any(il[:, :, None] == cl[:, None, :]), \
        "data and control electrodes overlap"
    cover = np.sort(np.concatenate([il, cl], axis=1), axis=1)
    assert np.all(cover == np.arange(E)[None, :]), \
        "inputs_list + control_list must cover all electrodes"


def local_receptive_field_forward(x, inputs_list, control_list, controls,
                                  mlp_params, out_size=None):
    """Forward pass equivalent of Local_Receptive_Field.forward (simulated processor)."""
    _check_electrode_partition(inputs_list, control_list)
    N = x.shape[0]
    patches = unfold_2x2(x)                                    # (N, L, 4)
    L = patches.shape[1]
    B = N * L
    elec_t = assemble_electrodes_t(patches, inputs_list, control_list, controls,
                                   jnp.bfloat16)               # (E_PAD, B) bf16, no pad pass
    tanh_dtype = _pick_tanh_dtype()
    out = dnpu_surrogate_pallas(elec_t, mlp_params, tanh_dtype)  # (1, B) f32
    out = out[0].reshape(N, L)                                 # torch.cat(..., dim=1)
    if out_size is None:
        return out
    return out.reshape(-1, out_size, out_size)


# ------------------------------- example run -------------------------------
if __name__ == "__main__":
    key = jax.random.PRNGKey(0)
    kx, kc, k1, k2, k3, kb1, kb2, kb3 = jax.random.split(key, 8)

    # Input image: N=2, C=1, H=W=16  ->  L = 8*8 = 64 nodes, out_size = 8
    N, C, H, W = 2, 1, 16, 16
    x = jax.random.normal(kx, (N, C, H, W), dtype=jnp.float32)
    L = (H // WINDOW) * (W // WINDOW)
    out_size = 8

    # Per-node electrode assignment: 4 data electrodes, 3 control electrodes.
    inputs_list = jnp.tile(jnp.array([[1, 2, 3, 4]], dtype=jnp.int32), (L, 1))   # (L, 4)
    control_list = jnp.tile(jnp.array([[0, 5, 6]], dtype=jnp.int32), (L, 1))     # (L, 3)

    # Learned control voltages per node (deterministic init).
    controls = 0.5 * jax.random.normal(kc, (L, 3), dtype=jnp.float32)

    # Deterministic synthetic surrogate-MLP parameters, stored pre-transposed.
    # Layer-1 bias is folded into W1's padded electrode column (column E == 7);
    # the electrode slab carries a matching 1.0 in its padded row.
    w1 = 0.3 * jax.random.normal(k1, (HID, E), dtype=jnp.float32)
    b1 = 0.1 * jax.random.normal(kb1, (HID, 1), dtype=jnp.float32)
    w1t = jnp.concatenate([w1, b1], axis=1).astype(jnp.bfloat16)       # (HID, E_PAD)
    w2t = (0.3 * jax.random.normal(k2, (HID, HID), dtype=jnp.float32)).astype(jnp.bfloat16)
    b2t = 0.1 * jax.random.normal(kb2, (HID, 1), dtype=jnp.float32)
    w3t = (0.3 * jax.random.normal(k3, (1, HID), dtype=jnp.float32)).astype(jnp.bfloat16)
    b3 = 0.1 * jax.random.normal(kb3, (1, 1), dtype=jnp.float32)
    mlp_params = (w1t, w2t, b2t, w3t, b3)

    y = local_receptive_field_forward(x, inputs_list, control_list, controls,
                                      mlp_params, out_size=out_size)
    y = jax.block_until_ready(y)
    assert y.shape == (N, out_size, out_size)
    assert bool(jnp.all(jnp.isfinite(y)))
    print("KERNEL_OK")
</pallas_src>

<mosaic_0001>
module attributes {stable_mosaic.version = 11 : i64} {
  func.func @kernel(%arg0: i32, %arg1: memref<8x128xbf16, #tpu.memory_space<vmem>>, %arg2: memref<32x8xbf16, #tpu.memory_space<vmem>>, %arg3: memref<32x32xbf16, #tpu.memory_space<vmem>>, %arg4: memref<32x1xf32, #tpu.memory_space<vmem>>, %arg5: memref<1x32xbf16, #tpu.memory_space<vmem>>, %arg6: memref<1x1xf32, #tpu.memory_space<smem>>, %arg7: memref<1x128xf32, #tpu.memory_space<vmem>>) attributes {dimension_semantics = [#tpu.dimension_semantics<parallel>], iteration_bounds = array<i64: 1>, scalar_prefetch = 0 : i64, scratch_operands = 0 : i64, tpu.core_type = #tpu.core_type<tc>, window_params = [{transform_indices = @transform_0, window_bounds = array<i64: 8, 128>}, {pipeline_mode = #tpu.pipeline_mode<synchronous>, transform_indices = @transform_1, window_bounds = array<i64: 32, 8>}, {pipeline_mode = #tpu.pipeline_mode<synchronous>, transform_indices = @transform_2, window_bounds = array<i64: 32, 32>}, {pipeline_mode = #tpu.pipeline_mode<synchronous>, transform_indices = @transform_3, window_bounds = array<i64: 32, 1>}, {pipeline_mode = #tpu.pipeline_mode<synchronous>, transform_indices = @transform_4, window_bounds = array<i64: 1, 32>}, {transform_indices = @transform_5, window_bounds = array<i64: 1, 1>}, {transform_indices = @transform_6, window_bounds = array<i64: 1, 128>}]} {
    %c0 = arith.constant 0 : index
    %c0_0 = arith.constant 0 : index
    %0 = vector.load %arg1[%c0, %c0_0] : memref<8x128xbf16, #tpu.memory_space<vmem>>, vector<8x128xbf16>
    %c0_1 = arith.constant 0 : index
    %c0_2 = arith.constant 0 : index
    %1 = vector.load %arg2[%c0_1, %c0_2] : memref<32x8xbf16, #tpu.memory_space<vmem>>, vector<32x8xbf16>
    %cst = arith.constant dense<0.000000e+00> : vector<32x128xf32>
    %2 = tpu.matmul %1, %0, %cst {dimension_numbers = #tpu.dot_dimension_numbers<[1], [0], [0], [1], [0, 0, 1, 1], [], []>} : vector<32x8xbf16>, vector<8x128xbf16>, vector<32x128xf32> -> vector<32x128xf32>
    %3 = math.tanh %2 : vector<32x128xf32>
    %c0_3 = arith.constant 0 : index
    %c0_4 = arith.constant 0 : index
    %4 = vector.load %arg3[%c0_3, %c0_4] : memref<32x32xbf16, #tpu.memory_space<vmem>>, vector<32x32xbf16>
    %5 = arith.truncf %3 : vector<32x128xf32> to vector<32x128xbf16>
    %cst_5 = arith.constant dense<0.000000e+00> : vector<32x128xf32>
    %6 = tpu.matmul %4, %5, %cst_5 {dimension_numbers = #tpu.dot_dimension_numbers<[1], [0], [0], [1], [0, 0, 1, 1], [], []>} : vector<32x32xbf16>, vector<32x128xbf16>, vector<32x128xf32> -> vector<32x128xf32>
    %c0_6 = arith.constant 0 : index
    %c0_7 = arith.constant 0 : index
    %7 = vector.load %arg4[%c0_6, %c0_7] : memref<32x1xf32, #tpu.memory_space<vmem>>, vector<32x1xf32>
    %8 = vector.broadcast %7 : vector<32x1xf32> to vector<32x128xf32>
    %9 = arith.addf %6, %8 : vector<32x128xf32>
    %10 = math.tanh %9 : vector<32x128xf32>
    %c0_8 = arith.constant 0 : index
    %c0_9 = arith.constant 0 : index
    %11 = vector.load %arg5[%c0_8, %c0_9] : memref<1x32xbf16, #tpu.memory_space<vmem>>, vector<1x32xbf16>
    %12 = arith.truncf %10 : vector<32x128xf32> to vector<32x128xbf16>
    %cst_10 = arith.constant dense<0.000000e+00> : vector<1x128xf32>
    %13 = tpu.matmul %11, %12, %cst_10 {dimension_numbers = #tpu.dot_dimension_numbers<[1], [0], [0], [1], [0, 0, 1, 1], [], []>} : vector<1x32xbf16>, vector<32x128xbf16>, vector<1x128xf32> -> vector<1x128xf32>
    %c0_11 = arith.constant 0 : index
    %c0_12 = arith.constant 0 : index
    %14 = memref.load %arg6[%c0_11, %c0_12] : memref<1x1xf32, #tpu.memory_space<smem>>
    %15 = vector.broadcast %14 : f32 to vector<1x128xf32>
    %16 = arith.addf %13, %15 : vector<1x128xf32>
    %c0_13 = arith.constant 0 : index
    %c0_14 = arith.constant 0 : index
    %17 = vector.load %arg7[%c0_13, %c0_14] : memref<1x128xf32, #tpu.memory_space<vmem>>, vector<1x128xf32>
    tpu.vector_store %arg7[%c0_13, %c0_14], %16 {strides = array<i32>} : memref<1x128xf32, #tpu.memory_space<vmem>>, vector<1x128xf32>,
    return
  }
  func.func @transform_0(%arg0: i32) -> (i32, i32) {
    %c0_i32 = arith.constant 0 : i32
    %c0_i32_0 = arith.constant 0 : i32
    return %c0_i32, %arg0 : i32, i32
  }
  func.func @transform_1(%arg0: i32) -> (i32, i32) {
    %c0_i32 = arith.constant 0 : i32
    %c0_i32_0 = arith.constant 0 : i32
    %c0_i32_1 = arith.constant 0 : i32
    return %c0_i32, %c0_i32_0 : i32, i32
  }
  func.func @transform_2(%arg0: i32) -> (i32, i32) {
    %c0_i32 = arith.constant 0 : i32
    %c0_i32_0 = arith.constant 0 : i32
    %c0_i32_1 = arith.constant 0 : i32
    return %c0_i32, %c0_i32_0 : i32, i32
  }
  func.func @transform_3(%arg0: i32) -> (i32, i32) {
    %c0_i32 = arith.constant 0 : i32
    %c0_i32_0 = arith.constant 0 : i32
    %c0_i32_1 = arith.constant 0 : i32
    return %c0_i32, %c0_i32_0 : i32, i32
  }
  func.func @transform_4(%arg0: i32) -> (i32, i32) {
    %c0_i32 = arith.constant 0 : i32
    %c0_i32_0 = arith.constant 0 : i32
    %c0_i32_1 = arith.constant 0 : i32
    return %c0_i32, %c0_i32_0 : i32, i32
  }
  func.func @transform_5(%arg0: i32) -> (i32, i32) {
    %c0_i32 = arith.constant 0 : i32
    %c0_i32_0 = arith.constant 0 : i32
    %c0_i32_1 = arith.constant 0 : i32
    return %c0_i32, %c0_i32_0 : i32, i32
  }
  func.func @transform_6(%arg0: i32) -> (i32, i32) {
    %c0_i32 = arith.constant 0 : i32
    %c0_i32_0 = arith.constant 0 : i32
    return %c0_i32, %arg0 : i32, i32
  }
}

</mosaic_0001>

<bundles_post_ra>
// kernel: tpu_custom_call.1
= control target key start
LH: loop header
LB: loop body
LE: loop exit
PB: predicated region body
PF: predicated region fallthrough
CT: control target
= control target key end

     0   :  { %vm48_vm0 = vcmask 1043456   ;;  %vm41_vm1 = vcmask 64512   ;;  %s447_s0 = inlined_call_operand.vmem [shape: bf16[8,128], index: 0, kind: input, shape index: {}]   ;;  %s448_s1 = inlined_call_operand.vmem [shape: bf16[32,8], index: 1, kind: input, shape index: {}]   ;;  %s449_s2 = inlined_call_operand.vmem [shape: bf16[32,32], index: 2, kind: input, shape index: {}]   ;;  %s450_s3 = inlined_call_operand.vmem [shape: f32[32,1], index: 3, kind: input, shape index: {}]   ;;  %s451_s4 = inlined_call_operand.vmem [shape: bf16[1,32], index: 4, kind: input, shape index: {}]   ;;  %s452_s5 = inlined_call_operand.<no memory space> [shape: f32[1,1], index: 5, kind: input, shape index: {}]   ;;  %s453_s6 = inlined_call_operand.hbm [shape: f32[1,128], index: 6, kind: output, shape index: {}]  }
   0x1   :  { %v26_v0 = vld [vmem:[%s447_s0] sm:$0xf]  ;;  %v317_v3 = vld [vmem:[%s448_s1 + $0x8] sm:$0xff]  }
   0x2   :  { %v316_v1 = vld [vmem:[%s448_s1] sm:$0xff]   ;;  %309 = vmatprep.subr.msk.bf16.mxu0 %vm48_vm0, %v26_v0  ;;  %v50_v2 = vsel %vm48_vm0, %v26_v0, 0 }
   0x3   :  { %288 = vmatpush3.bf16.msra.mxu0 %v50_v2  ;;  %289 = vmatprep.mubr.msk.bf16.mxu0 %vm41_vm1, %v316_v1 }
   0x4   :  { %12 = vsyncpa [#allocation4], 0  ;;  %v318_v4 = vld [vmem:[%s449_s2] sm:$0xff]   ;;  %vm145_vm2 = vcmask 261120   ;;  %v113_v6 = vld [vmem:[%s450_s3 + $0x10] sm:$0xff]  ;;  %v360_v7 = vmov 0   ;;  %v209_v41 = vstv %s452_s5 }
   0x5   :  { %297 = vmatprep.mubr.msk.bf16.mxu1 %vm145_vm2, %v318_v4  ;;  %v111_v5 = vld [vmem:[%s450_s3] sm:$0xff]  ;;  %314 = vset.pattern.permute.xlu0 %v360_v7  ;;  %v112_v8 = vld [vmem:[%s450_s3 + $0x8] sm:$0xff]  ;;  %v114_v9 = vld [vmem:[%s450_s3 + $0x18] sm:$0xff]  ;;  %v361_v21 = vmov 0.0   ;;  %vm362_vm3 = vmmov 0   ;;  %s363_s15 = smov [#allocation3]  }
   0x6   :  { %290 = vmatmul.mubr.msk.bf16.vlgmr.msra.gmra.mrb[0].mxu0 %vm41_vm1, %v317_v3  ;;  %315 = vset.pattern.permute.xlu1 %v360_v7  ;;  %v319_v20 = vld [vmem:[%s449_s2 + $0x8] sm:$0xff]   ;;  %v205_v40 = vld [vmem:[%s451_s4] sm:$0x1]  ;;  %s260_s16 = sshll.u32 %s363_s15, 4  ;;  %s261_s16 = int_to_ptr.vmem [resolvable:$true] %s260_s16 }
   0x7   :  { %117 = vperm.xlu0 %314, %v111_v5   ;;  %127 = vperm.xlu1 %315, %v113_v6   ;;  %s336_s17 = scalar_lea.vmem %s261_s16, 16  ;;  %s340_s18 = scalar_lea.vmem %s261_s16, 32 }
   0x8   :  { %301 = vmatprep.subr.bf16.mxu0 %v361_v21  ;;  %305 = vmatprep.mubr.msk.bf16.mxu0 %vm362_vm3, %v361_v21  ;;  %p337_p0 = scmp.ne.s32.totalorder %s261_s16, %s336_s17  ;;  %p341_p1 = scmp.lt.s32.totalorder %s261_s16, %s261_s16 }
   0x9   :  { %p342_p2 = scmp.lt.s32.totalorder %s340_s18, %s336_s17 }
   0xb   :  { %122 = vperm.xlu0 %314, %v112_v8   ;;  %132 = vperm.xlu1 %315, %v114_v9   ;;  %p343_p3 = por %p342_p2, %p341_p1 }
   0xd   :  { %p344_p4 = pnand %p343_p3, %p337_p0 }
  0x86   :  { %v128_v22 = vpop.permute.xlu1 %127  ;;  %v118_v23 = vpop.permute.xlu0 %117 }
  0x8a   :  { %v133_v25 = vpop.permute.xlu1 %132  ;;  %v123_v30 = vpop.permute.xlu0 %122 }
  0xd9   :  { %v291_v10 = vpop.f32.mrb[0].mxu0 }
  0xda   :  { %320 = vtanh.f32 %v291_v10  ;;  %v86_v11 = vpop.f32.mrb[1].mxu0 }
  0xdb   :  { %322 = vtanh.f32 %v86_v11  ;;  %v292_v12 = vpop.f32.mrb[2].mxu0 }
  0xdc   :  { %324 = vtanh.f32 %v292_v12  ;;  %v89_v13 = vpop.f32.mrb[3].mxu0 }
  0xdd   :  { %326 = vtanh.f32 %v89_v13 }
  0xe4   :  { %v321_v14 = vpop.eup %320 }
  0xe5   :  { %v323_v15 = vpop.eup %322 }
  0xe6   :  { %v325_v16 = vpop.eup %324 }
  0xe7   :  { %v327_v17 = vpop.eup %326  ;;  %v110_v18 = vpack.c.bf16 %v325_v16, %v321_v14 }
  0xe8   :  { %v109_v19 = vpack.c.bf16 %v327_v17, %v323_v15 }
  0xea   :  { %293 = vmatprep.subr.bf16.mxu1 %v109_v19 }
  0xeb   :  { %294 = vmatpush3.bf16.msra.mxu1 %v109_v19 }
  0xec   :  { %295 = vmatprep.subr.bf16.mxu1 %v110_v18 }
  0xef   :  { %296 = vmatpush3.bf16.msra.mxu1 %v110_v18 }
  0xf2   :  { %298 = vmatmul.mubr.msk.bf16.vlgmr.msra.gmra.mrb[0].mxu1 %vm145_vm2, %v319_v20 }
 0x1c5   :  { %v299_v24 = vpop.f32.mrb[0].mxu1 }
 0x1c6   :  { %v195_v26 = vadd.f32 %v299_v24, %v128_v22  ;;  %v186_v27 = vpop.f32.mrb[1].mxu1 }
 0x1c7   :  { %v187_v28 = vadd.f32 %v186_v27, %v118_v23  ;;  %v300_v29 = vpop.f32.mrb[2].mxu1 }
 0x1c8   :  { %328 = vtanh.f32 %v195_v26  ;;  %v198_v31 = vadd.f32 %v300_v29, %v133_v25  ;;  %v189_v32 = vpop.f32.mrb[3].mxu1 }
 0x1c9   :  { %330 = vtanh.f32 %v187_v28  ;;  %v190_v33 = vadd.f32 %v189_v32, %v123_v30 }
 0x1ca   :  { %332 = vtanh.f32 %v198_v31 }
 0x1cb   :  { %334 = vtanh.f32 %v190_v33 }
 0x1d2   :  { %v329_v34 = vpop.eup %328 }
 0x1d3   :  { %v331_v35 = vpop.eup %330 }
 0x1d4   :  { %v333_v36 = vpop.eup %332 }
 0x1d5   :  { %v335_v37 = vpop.eup %334  ;;  %v207_v38 = vpack.c.bf16 %v333_v36, %v329_v34 }
 0x1d6   :  { %v206_v39 = vpack.c.bf16 %v335_v37, %v331_v35 }
 0x1d8   :  { %302 = vmatpush3.bf16.msra.mxu0 %v206_v39 }
 0x1d9   :  { %303 = vmatprep.subr.bf16.mxu0 %v361_v21 }
 0x1dc   :  { %304 = vmatpush3.bf16.msra.mxu0 %v207_v38 }
 0x1df   :  { %306 = vmatmul.mubr.msk.bf16.vlgmr.msra.gmra.mrb[4].mxu0 %vm145_vm2, %v205_v40 }
 0x2b2   :  { %v247_v42 = vpop.f32.mrb[4].mxu0 }
 0x2b3   :  { %v248_v43 = vadd.f32 %v247_v42, %v209_v41  ;;  %v307_v44 = vpop.f32.mrb[5].mxu0 }
 0x2b4   :  { %v250_v45 = vpop.f32.mrb[6].mxu0 }
 0x2b5   :  { %253 = vst [vmem:[#allocation3] sm:$0x1] %v248_v43  ;;  %v308_v46 = vpop.f32.mrb[7].mxu0 }
 0x2b6   :  { %347 = shalt.err (!%p344_p4)
}
 0x2b7   :  { %s348_s5 = scalar_lea.hbm %s453_s6, 16 }
 0x2b8   :  { %p349_p5 = scmp.ne.s32.totalorder %s453_s6, %s348_s5  ;;  %p352_p6 = scmp.lt.u32.totalorder %s348_s5, %s453_s6 }
 0x2ba   :  { %p354_p7 = pnand %p352_p6, %p349_p5 }
 0x2bc   :  { %357 = shalt.err (!%p354_p7)
}
 0x2bd   :  { %263 = dma.vmem_to_hbm [thread:$0]  %s261_s16, 16, %s453_s6, [#allocation4]  }
 0x2be   :  { %358 = dma.done.wait [#allocation4], 16  }
 0x2bf   :  { %359 = vsyncadd [#allocation4], 4294967280 }
 0x2c0   :  { %267 = vsyncpa [#allocation4], 1 }

</bundles_post_ra>
